<compile_context>
chip_gen: v7x
topology: tpu7x:2x2x1
jax: 0.10.0
libtpu: 0.0.40
codegen_flags: <defaults>
</compile_context>

<pallas_src>
import functools

import jax
import jax.numpy as jnp
from jax import lax
from jax.experimental import pallas as pl
from jax.experimental.pallas import tpu as pltpu

_LANE = 128
_SUBLANE = 8


def _l1_range_kernel(pred_ref, tgt_ref, out_ref, *,
                     tile_rows, tiles_per_split, num_full_tiles,
                     valid_rows, need_row_mask):
    c = pl.program_id(0)   # TensorCore-split axis ("parallel")
    i = pl.program_id(1)   # sequential reduction axis ("arbitrary")

    @pl.when(i == 0)
    def _():
        out_ref[...] = jnp.zeros_like(out_ref)

    # Cast in-register (HBM traffic stays at the input dtype width).
    pred = pred_ref[...].astype(jnp.float32)
    tgt = tgt_ref[...].astype(jnp.float32)

    # where(target == -1, 0, |pred - target|)  ==  |masked_pred - target|
    contrib = jnp.where(tgt == jnp.float32(-1.0), jnp.float32(0.0),
                        jnp.abs(pred - tgt))

    def accumulate(x):
        if tile_rows % _SUBLANE == 0:
            # Fold (tile_rows, 128) down to one (8, 128) vreg with pure VPU
            # adds (rows k, k+8, k+16, ... share a sublane); no XLU cross-lane
            # reduction and no scalar RMW on the hot path.
            out_ref[...] += x.reshape(tile_rows // _SUBLANE, _SUBLANE,
                                      _LANE).sum(axis=0)
        else:
            # Tiny single-tile inputs (block rows == full array rows, not a
            # multiple of 8): one small sublane reduce is fine here.
            out_ref[0:1, :] += x.sum(axis=0, keepdims=True)

    if need_row_mask:
        g = c * tiles_per_split + i   # logical (unclamped) tile index

        # Hot path: fully-valid tiles skip the mask entirely.
        @pl.when(g < num_full_tiles)
        def _():
            accumulate(contrib)

        # Ragged last tile and/or the clamped extra step of an odd 2-way
        # split: rows past the true row count contribute exactly 0.
        @pl.when(g >= num_full_tiles)
        def _():
            row = (g * tile_rows
                   + lax.broadcasted_iota(jnp.int32, (tile_rows, _LANE), 0))
            accumulate(jnp.where(row >= valid_rows, jnp.float32(0.0), contrib))
    else:
        accumulate(contrib)


def _masked_l1_sum(pred, tgt):
    p = pred.astype(jnp.float32)
    t = tgt.astype(jnp.float32)
    return jnp.sum(jnp.where(t == jnp.float32(-1.0), jnp.float32(0.0),
                             jnp.abs(p - t)))


def _default_tile_rows(itemsize):
    # Target ~2 MiB per input per pipeline buffer (2 inputs x 2 buffers =
    # 8 MiB at f32) -> fits every chip's default scoped VMEM and keeps the
    # ~0.35 us per-step overhead under ~10% of the mem-bound step time.
    # On v7x (~3.2 TB/s per TC) double the target; narrow dtypes (bf16) get
    # 2x the rows automatically for the same byte footprint.
    target_bytes = 2 * 1024 * 1024
    try:
        info = pltpu.get_tpu_info()
        if "7" in str(getattr(info, "chip_version", "")):
            target_bytes = 4 * 1024 * 1024
    except Exception:
        pass
    tr = target_bytes // (_LANE * itemsize)
    return max(_SUBLANE, (tr // _SUBLANE) * _SUBLANE)


def loss_range_pallas(pred, target, *, tile_rows=None):
    """mean(|where(target == -1, -1, pred) - target|) over all elements."""
    assert pred.shape == target.shape
    n_elems = pred.size                      # divisor for 'mean'
    itemsize = jnp.dtype(pred.dtype).itemsize
    if tile_rows is None:
        tile_rows = _default_tile_rows(itemsize)
    if tile_rows % _SUBLANE != 0:
        raise ValueError("tile_rows must be a multiple of 8")

    pred_f = pred.reshape(-1)
    tgt_f = target.reshape(-1)

    # Kernel runs on the lane-aligned prefix; the (<128-element) ragged tail
    # is summed with plain jnp -- no full-array pad/concat copy in HBM.
    n_main = (n_elems // _LANE) * _LANE
    if n_main == 0:
        # Degenerate tiny input: nothing lane-aligned to run the kernel on.
        return _masked_l1_sum(pred_f, tgt_f) / jnp.float32(n_elems)

    m = n_main // _LANE
    pred2d = pred_f[:n_main].reshape(m, _LANE)
    tgt2d = tgt_f[:n_main].reshape(m, _LANE)

    # Block row count: full array dim for small inputs, else the big tile.
    tr = min(tile_rows, m)
    num_tiles = pl.cdiv(m, tr)

    # Shard the reduction across 2 TensorCores whenever there is more than one
    # tile (v7x megacore); harmless serialized size-2 axis on v5e/v6e.  Odd
    # tile counts get a clamped, fully-masked extra step instead of losing the
    # split.
    num_splits = 2 if num_tiles >= 2 else 1
    tiles_per_split = pl.cdiv(num_tiles, num_splits)
    needs_clamp = (num_splits * tiles_per_split != num_tiles)
    need_row_mask = needs_clamp or (m % tr != 0)
    num_full_tiles = m // tr

    if needs_clamp:
        def block_row(c, i):
            return jnp.minimum(c * tiles_per_split + i, num_tiles - 1)
    else:
        def block_row(c, i):
            return c * tiles_per_split + i

    kernel = functools.partial(
        _l1_range_kernel,
        tile_rows=tr,
        tiles_per_split=tiles_per_split,
        num_full_tiles=num_full_tiles,
        valid_rows=m,
        need_row_mask=need_row_mask,
    )

    in_bytes = 2 * n_main * itemsize
    cost = pl.CostEstimate(
        flops=3 * n_main,                     # sub, abs, add per element
        transcendentals=0,
        bytes_accessed=in_bytes + num_splits * _SUBLANE * _LANE * 4,
    )

    partials = pl.pallas_call(
        kernel,
        out_shape=jax.ShapeDtypeStruct((num_splits * _SUBLANE, _LANE),
                                       jnp.float32),
        grid_spec=pltpu.PrefetchScalarGridSpec(
            num_scalar_prefetch=0,
            grid=(num_splits, tiles_per_split),
            in_specs=[
                pl.BlockSpec((tr, _LANE), lambda c, i: (block_row(c, i), 0)),
                pl.BlockSpec((tr, _LANE), lambda c, i: (block_row(c, i), 0)),
            ],
            out_specs=pl.BlockSpec((_SUBLANE, _LANE), lambda c, i: (c, 0)),
        ),
        compiler_params=pltpu.CompilerParams(
            dimension_semantics=("parallel", "arbitrary"),
            vmem_limit_bytes=32 * 1024 * 1024,
        ),
        cost_estimate=cost,
    )(pred2d, tgt2d)

    total = jnp.sum(partials)
    if n_main != n_elems:
        total = total + _masked_l1_sum(pred_f[n_main:], tgt_f[n_main:])
    return total / jnp.float32(n_elems)


def loss_range_ref(pred, target):
    masked = jnp.where(target == -1.0, -1.0, pred)
    return jnp.mean(jnp.abs(masked - target))


def _make_inputs(key, shape, invalid_frac=0.3):
    k1, k2, k3 = jax.random.split(key, 3)
    pred = jax.random.uniform(k1, shape, jnp.float32, 0.0, 50.0)
    target = jax.random.uniform(k2, shape, jnp.float32, 0.0, 50.0)
    target = jnp.where(jax.random.uniform(k3, shape) < invalid_frac,
                       -1.0, target)
    return pred, target


def _check(pred, target, **kw):
    out = loss_range_pallas(pred, target, **kw)
    jax.block_until_ready(out)
    ref = loss_range_ref(pred, target)
    assert jnp.allclose(out, ref, rtol=1e-5, atol=1e-6), (out, ref)


if __name__ == "__main__":
    keys = jax.random.split(jax.random.PRNGKey(0), 5)

    # 1) Default big-tile path: small NCHW range image, ~30% invalid pixels.
    pred, target = _make_inputs(keys[0], (2, 1, 16, 64))
    _check(pred, target)

    # 2) Odd tile count -> 2-way TC split with a clamped, fully-masked step.
    pred, target = _make_inputs(keys[1], (2, 1, 24, 64))   # m=24, tr=8 -> 3 tiles
    _check(pred, target, tile_rows=8)

    # 3) Ragged last row-block combined with the 2-way split (+ clamped step).
    pred, target = _make_inputs(keys[2], (2, 1, 20, 64))   # m=20, tr=8
    _check(pred, target, tile_rows=8)

    # 4) Element count not a multiple of 128 -> lane-aligned prefix + jnp tail.
    pred, target = _make_inputs(keys[3], (2, 1, 16, 65))
    _check(pred, target)

    # 5) Row count not a multiple of 8 (single full-dim block fold path).
    pred, target = _make_inputs(keys[4], (2, 1, 10, 64))   # m=10
    _check(pred, target)

    print("KERNEL_OK")
</pallas_src>

<mosaic_0001>
module attributes {stable_mosaic.version = 11 : i64} {
  func.func @_l1_range_kernel(%arg0: i32, %arg1: i32, %arg2: memref<16x128xf32, #tpu.memory_space<vmem>>, %arg3: memref<16x128xf32, #tpu.memory_space<vmem>>, %arg4: memref<8x128xf32, #tpu.memory_space<vmem>>) attributes {dimension_semantics = [#tpu.dimension_semantics<parallel>, #tpu.dimension_semantics<arbitrary>], iteration_bounds = array<i64: 1, 1>, scalar_prefetch = 0 : i64, scratch_operands = 0 : i64, tpu.core_type = #tpu.core_type<tc>, window_params = [{transform_indices = @transform_0, window_bounds = array<i64: 16, 128>}, {transform_indices = @transform_1, window_bounds = array<i64: 16, 128>}, {transform_indices = @transform_2, window_bounds = array<i64: 8, 128>}]} {
    %c0_i32 = arith.constant 0 : i32
    %0 = arith.cmpi eq, %arg1, %c0_i32 : i32
    %1 = arith.extui %0 : i1 to i32
    %c0_i32_0 = arith.constant 0 : i32
    %2 = arith.cmpi ne, %1, %c0_i32_0 : i32
    scf.if %2 {
      %cst_10 = arith.constant 0.000000e+00 : f32
      %16 = vector.broadcast %cst_10 : f32 to vector<8x128xf32>
      %c0_11 = arith.constant 0 : index
      %c0_12 = arith.constant 0 : index
      %17 = vector.load %arg4[%c0_11, %c0_12] : memref<8x128xf32, #tpu.memory_space<vmem>>, vector<8x128xf32>
      tpu.vector_store %arg4[%c0_11, %c0_12], %16 {strides = array<i32>} : memref<8x128xf32, #tpu.memory_space<vmem>>, vector<8x128xf32>,
    } else {
    }
    %c0 = arith.constant 0 : index
    %c0_1 = arith.constant 0 : index
    %3 = vector.load %arg2[%c0, %c0_1] : memref<16x128xf32, #tpu.memory_space<vmem>>, vector<16x128xf32>
    %c0_2 = arith.constant 0 : index
    %c0_3 = arith.constant 0 : index
    %4 = vector.load %arg3[%c0_2, %c0_3] : memref<16x128xf32, #tpu.memory_space<vmem>>, vector<16x128xf32>
    %cst = arith.constant -1.000000e+00 : f32
    %5 = vector.broadcast %cst : f32 to vector<16x128xf32>
    %6 = arith.cmpf oeq, %4, %5 : vector<16x128xf32>
    %7 = arith.subf %3, %4 : vector<16x128xf32>
    %8 = math.absf %7 : vector<16x128xf32>
    %cst_4 = arith.constant 0.000000e+00 : f32
    %9 = vector.broadcast %cst_4 : f32 to vector<16x128xf32>
    %10 = arith.select %6, %9, %8 : vector<16x128xi1>, vector<16x128xf32>
    %c0_5 = arith.constant 0 : index
    %c0_6 = arith.constant 0 : index
    %11 = vector.load %arg4[%c0_5, %c0_6] : memref<8x128xf32, #tpu.memory_space<vmem>>, vector<8x128xf32>
    %12 = vector.shape_cast %10 : vector<16x128xf32> to vector<2x8x128xf32>
    %cst_7 = arith.constant dense<0.000000e+00> : vector<8x128xf32>
    %13 = vector.multi_reduction <add>, %12, %cst_7 [0] : vector<2x8x128xf32> to vector<8x128xf32>
    %14 = arith.addf %11, %13 : vector<8x128xf32>
    %c0_8 = arith.constant 0 : index
    %c0_9 = arith.constant 0 : index
    %15 = vector.load %arg4[%c0_8, %c0_9] : memref<8x128xf32, #tpu.memory_space<vmem>>, vector<8x128xf32>
    tpu.vector_store %arg4[%c0_8, %c0_9], %14 {strides = array<i32>} : memref<8x128xf32, #tpu.memory_space<vmem>>, vector<8x128xf32>,
    return
  }
  func.func @transform_0(%arg0: i32, %arg1: i32) -> (i32, i32) {
    %c1_i32 = arith.constant 1 : i32
    %0 = arith.muli %arg0, %c1_i32 : i32
    %1 = arith.addi %0, %arg1 : i32
    %c0_i32 = arith.constant 0 : i32
    %c0_i32_0 = arith.constant 0 : i32
    return %1, %c0_i32 : i32, i32
  }
  func.func @transform_1(%arg0: i32, %arg1: i32) -> (i32, i32) {
    %c1_i32 = arith.constant 1 : i32
    %0 = arith.muli %arg0, %c1_i32 : i32
    %1 = arith.addi %0, %arg1 : i32
    %c0_i32 = arith.constant 0 : i32
    %c0_i32_0 = arith.constant 0 : i32
    return %1, %c0_i32 : i32, i32
  }
  func.func @transform_2(%arg0: i32, %arg1: i32) -> (i32, i32) {
    %c0_i32 = arith.constant 0 : i32
    %c0_i32_0 = arith.constant 0 : i32
    return %arg0, %c0_i32 : i32, i32
  }
}

</mosaic_0001>

<bundles_post_ra>
// kernel: tpu_custom_call.1
= control target key start
LH: loop header
LB: loop body
LE: loop exit
PB: predicated region body
PF: predicated region fallthrough
CT: control target
= control target key end

     0   :  { %7 = vsyncpa [#allocation3], 0  ;;  %s223_s0 = inlined_call_operand.hbm [shape: f32[16,128], index: 0, kind: input, shape index: {}]   ;;  %s224_s1 = inlined_call_operand.hbm [shape: f32[16,128], index: 1, kind: input, shape index: {}]   ;;  %s225_s2 = inlined_call_operand.hbm [shape: f32[8,128], index: 2, kind: output, shape index: {}]  }
   0x1   :  { %8 = vsyncpa [#allocation6], 0 }
   0x2   :  { %9 = vsyncpa [#allocation4], 0  ;;  %s167_s9 = smov [#allocation2]   ;;  %s95_s13 = scalar_lea.hbm %s223_s0, 256 }
   0x3   :  { %s19_s10 = sshll.u32 %s167_s9, 4  ;;  %p96_p0 = scmp.ne.s32.totalorder %s223_s0, %s95_s13  ;;  %s20_s10 = int_to_ptr.vmem [resolvable:$true] %s19_s10 }
   0x4   :  { %p99_p1 = scmp.lt.u32.totalorder %s95_s13, %s223_s0 }
   0x6   :  { %p101_p2 = pnand %p99_p1, %p96_p0 }
   0x8   :  { %104 = shalt.err (!%p101_p2)
}
   0x9   :  { %s105_s18 = scalar_lea.vmem %s20_s10, 256  ;;  %p110_p4 = scmp.lt.s32.totalorder %s20_s10, %s20_s10 }
   0xa   :  { %p106_p3 = scmp.ne.s32.totalorder %s20_s10, %s105_s18  ;;  %p111_p5 = scmp.lt.s32.totalorder %s105_s18, %s105_s18 }
   0xc   :  { %p112_p6 = por %p111_p5, %p110_p4 }
   0xe   :  { %p113_p7 = pnand %p112_p6, %p106_p3 }
  0x10   :  { %116 = shalt.err (!%p113_p7)
}
  0x11   :  { %s168_s19 = smov 128   ;;  %s169_s20 = smov 8  }
  0x12   :  { %25 = dma.hbm_to_vmem [thread:$0]  %s223_s0, 256, %s20_s10, [#allocation3], %s168_s19, %s168_s19, %s169_s20  }
  0x13   :  { %s170_s23 = smov [#allocation5]   ;;  %s117_s27 = scalar_lea.hbm %s224_s1, 256 }
  0x14   :  { %s35_s24 = sshll.u32 %s170_s23, 4  ;;  %p118_p8 = scmp.ne.s32.totalorder %s224_s1, %s117_s27  ;;  %s36_s24 = int_to_ptr.vmem [resolvable:$true] %s35_s24 }
  0x15   :  { %p121_p9 = scmp.lt.u32.totalorder %s117_s27, %s224_s1 }
  0x17   :  { %p123_p10 = pnand %p121_p9, %p118_p8 }
  0x19   :  { %126 = shalt.err (!%p123_p10)
}
  0x1a   :  { %s127_s4 = scalar_lea.vmem %s36_s24, 256  ;;  %p132_p12 = scmp.lt.s32.totalorder %s36_s24, %s36_s24 }
  0x1b   :  { %p128_p11 = scmp.ne.s32.totalorder %s36_s24, %s127_s4  ;;  %p133_p13 = scmp.lt.s32.totalorder %s127_s4, %s127_s4 }
  0x1d   :  { %p134_p0 = por %p133_p13, %p132_p12 }
  0x1f   :  { %p135_p1 = pnand %p134_p0, %p128_p11 }
  0x21   :  { %138 = shalt.err (!%p135_p1)
}
  0x22   :  { %41 = dma.hbm_to_vmem [thread:$0]  %s224_s1, 256, %s36_s24, [#allocation6], %s168_s19, %s168_s19, %s169_s20  }
  0x23   :  { %161 = dma.done.wait [#allocation3], 256  }
  0x24   :  { %162 = vsyncadd [#allocation3], 4294967040 }
  0x25   :  { %163 = dma.done.wait [#allocation6], 256  }
  0x26   :  { %164 = vsyncadd [#allocation6], 4294967040  ;;  %v57_v0 = vld [vmem:[#allocation2] sm:$0xff]  ;;  %v58_v1 = vld [vmem:[#allocation2 + $0x8] sm:$0xff]  ;;  %s171_s6 = smov [#allocation7]  }
  0x27   :  { %v59_v2 = vld [vmem:[#allocation5] sm:$0xff]  ;;  %v60_v3 = vld [vmem:[#allocation5 + $0x8] sm:$0xff]  ;;  %s79_s7 = sshll.u32 %s171_s6, 4  ;;  %s80_s7 = int_to_ptr.vmem [resolvable:$true] %s79_s7 }
  0x28   :  { %v63_v4 = vsub.f32 %v57_v0, %v59_v2  ;;  %vm61_vm0 = vcmp.eq.f32.partialorder %v59_v2, -1.0  ;;  %v64_v5 = vsub.f32 %v58_v1, %v60_v3  ;;  %vm62_vm1 = vcmp.eq.f32.partialorder %v60_v3, -1.0  ;;  %s139_s1 = scalar_lea.vmem %s80_s7, 128  ;;  %p144_p3 = scmp.lt.s32.totalorder %s80_s7, %s80_s7 }
  0x29   :  { %p140_p2 = scmp.ne.s32.totalorder %s80_s7, %s139_s1  ;;  %p145_p4 = scmp.lt.s32.totalorder %s139_s1, %s139_s1 }
  0x2a   :  { %v65_v6 = vand.u32 2147483647, %v63_v4  ;;  %v66_v7 = vand.u32 2147483647, %v64_v5 }
  0x2b   :  { %p146_p5 = por %p145_p4, %p144_p3 }
  0x2c   :  { %v67_v8 = vsel %vm61_vm0, 0.0, %v65_v6  ;;  %v68_v9 = vsel %vm62_vm1, 0.0, %v66_v7 }
  0x2d   :  { %v70_v10 = vadd.f32 %v68_v9, %v67_v8  ;;  %p147_p6 = pnand %p146_p5, %p140_p2 }
  0x2f   :  { %72 = vst [vmem:[#allocation7] sm:$0xff] %v70_v10 }
  0x30   :  { %150 = shalt.err (!%p147_p6)
}
  0x31   :  { %s151_s10 = scalar_lea.hbm %s225_s2, 128 }
  0x32   :  { %p152_p7 = scmp.ne.s32.totalorder %s225_s2, %s151_s10  ;;  %p155_p8 = scmp.lt.u32.totalorder %s151_s10, %s225_s2 }
  0x34   :  { %p157_p9 = pnand %p155_p8, %p152_p7 }
  0x36   :  { %160 = shalt.err (!%p157_p9)
}
  0x37   :  { %82 = dma.vmem_to_hbm [thread:$0]  %s80_s7, 128, %s225_s2, [#allocation4]  }
  0x38   :  { %165 = dma.done.wait [#allocation4], 128  }
  0x39   :  { %166 = vsyncadd [#allocation4], 4294967168 }
  0x3a   :  { %86 = vsyncpa [#allocation3], 1 }
  0x3b   :  { %87 = vsyncpa [#allocation6], 1 }
  0x3c   :  { %88 = vsyncpa [#allocation4], 1 }

</bundles_post_ra>
